<compile_context>
chip_gen: v7x
topology: tpu7x:2x2x1
jax: 0.10.0
libtpu: 0.0.40
codegen_flags: <defaults>
</compile_context>

<pallas_src>
import functools

import jax
import jax.numpy as jnp
from jax import lax
from jax.experimental import pallas as pl
from jax.experimental.pallas import tpu as pltpu


def _matmul_rhs_t(x, w):
    """x: (M, d_in), w: (d_out, d_in) -> (M, d_out) = x @ w^T.

    Contract the last dim of BOTH operands so Mosaic feeds the MXU directly
    (no XLU transpose of the loaded weight tile).
    """
    return lax.dot_general(
        x, w,
        dimension_numbers=(((1,), (1,)), ((), ())),
        preferred_element_type=jnp.float32,
    )


def fused_attention_kernel(
    q_in_ref, k_in_ref, v_in_ref,
    wq_ref, bq_ref, wk_ref, bk_ref, wv_ref, bv_ref, wo_ref, bo_ref,
    o_ref,
    kp_ref, vp_ref,
    *, d_k, d_v, h, scale,
):
    qt = pl.program_id(1)

    # --- K / V projections: compute once per batch (first q tile), cache in VMEM.
    @pl.when(qt == 0)
    def _():
        keys = k_in_ref[0]                                   # (nk, d_model)
        vals = v_in_ref[0]                                   # (nk, d_v)
        kp_ref[...] = _matmul_rhs_t(keys, wk_ref[...]) + bk_ref[...]
        vp_ref[...] = _matmul_rhs_t(vals, wv_ref[...]) + bv_ref[...]

    # --- Q projection for this q tile, pre-scaled by 1/sqrt(d_k).
    q = _matmul_rhs_t(q_in_ref[0], wq_ref[...]) + bq_ref[...]  # (TQ, h*d_k)
    q = q * scale

    kp = kp_ref[...]                                          # (nk, h*d_k)
    vp = vp_ref[...]                                          # (nk, h*d_v)

    # --- per-head scaled dot-product attention (static unroll over heads).
    head_outs = []
    for hh in range(h):
        q_h = q[:, hh * d_k:(hh + 1) * d_k]                   # (TQ, d_k)
        k_h = kp[:, hh * d_k:(hh + 1) * d_k]                  # (nk, d_k)
        v_h = vp[:, hh * d_v:(hh + 1) * d_v]                  # (nk, d_v)

        att = lax.dot_general(                                # q_h @ k_h^T
            q_h, k_h,
            dimension_numbers=(((1,), (1,)), ((), ())),
            preferred_element_type=jnp.float32,
        )                                                     # (TQ, nk)
        att = att - jnp.max(att, axis=-1, keepdims=True)
        p = jnp.exp(att)
        inv = pl.reciprocal(jnp.sum(p, axis=-1, keepdims=True), approx=True)
        p = p * inv
        head_outs.append(
            jnp.dot(p, v_h, preferred_element_type=jnp.float32)
        )                                                     # (TQ, d_v)

    out_heads = jnp.concatenate(head_outs, axis=-1)           # (TQ, h*d_v)

    # --- output projection, write the full (TQ, d_model) slab.
    out = _matmul_rhs_t(out_heads, wo_ref[...]) + bo_ref[...]
    o_ref[0] = out.astype(o_ref.dtype)


def scaled_dot_product_attention(params, queries, keys, values, d_k, d_v, h,
                                 *, q_tile=None):
    """queries: (b_s, nq, d_model), keys: (b_s, nk, d_model), values: (b_s, nk, d_v)."""
    b_s, nq, d_model = queries.shape
    nk = keys.shape[1]
    d_v_in = values.shape[-1]
    h_dk = h * d_k
    h_dv = h * d_v

    # Pick a q tile that keeps VMEM bounded at large nq; small nq = one tile.
    if q_tile is None:
        q_tile = nq if nq <= 512 else 512
    if q_tile != nq:
        assert q_tile % 8 == 0, "q_tile must be a multiple of 8 (sublane)"
    n_qt = pl.cdiv(nq, q_tile)

    scale = 1.0 / (float(d_k) ** 0.5)

    # Biases as (1, d_out) rows for clean TPU broadcast layout.
    bq = params["bq"].reshape(1, h_dk)
    bk = params["bk"].reshape(1, h_dk)
    bv = params["bv"].reshape(1, h_dv)
    bo = params["bo"].reshape(1, d_model)

    kern = functools.partial(
        fused_attention_kernel, d_k=d_k, d_v=d_v, h=h, scale=scale)

    def full2d(shape):
        return pl.BlockSpec(shape, lambda b, qt: (0, 0))

    def per_batch(shape):
        return pl.BlockSpec(shape, lambda b, qt: (b, 0, 0))

    return pl.pallas_call(
        kern,
        out_shape=jax.ShapeDtypeStruct((b_s, nq, d_model), queries.dtype),
        grid_spec=pltpu.PrefetchScalarGridSpec(
            num_scalar_prefetch=0,
            grid=(b_s, n_qt),
            in_specs=[
                pl.BlockSpec((1, q_tile, d_model), lambda b, qt: (b, qt, 0)),
                per_batch((1, nk, d_model)),
                per_batch((1, nk, d_v_in)),
                full2d((h_dk, d_model)),   # wq
                full2d((1, h_dk)),         # bq
                full2d((h_dk, d_model)),   # wk
                full2d((1, h_dk)),         # bk
                full2d((h_dv, d_v_in)),    # wv
                full2d((1, h_dv)),         # bv
                full2d((d_model, h_dv)),   # wo
                full2d((1, d_model)),      # bo
            ],
            out_specs=pl.BlockSpec((1, q_tile, d_model), lambda b, qt: (b, qt, 0)),
            scratch_shapes=[
                pltpu.VMEM((nk, h_dk), jnp.float32),   # cached K projection
                pltpu.VMEM((nk, h_dv), jnp.float32),   # cached V projection
            ],
        ),
        compiler_params=pltpu.CompilerParams(
            dimension_semantics=("parallel", "arbitrary"),
            vmem_limit_bytes=32 * 1024 * 1024,
        ),
    )(queries, keys, values,
      params["wq"], bq, params["wk"], bk, params["wv"], bv, params["wo"], bo)


# ----------------------------------------------------------------------------
# Params (matches init_weights(): Linear weights ~ N(0, 0.001), biases = 0)
# ----------------------------------------------------------------------------
def init_params(key, d_model, d_k, d_v, h):
    ks = jax.random.split(key, 4)
    std = 0.001
    return {
        "wq": jax.random.normal(ks[0], (h * d_k, d_model), jnp.float32) * std,
        "bq": jnp.zeros((h * d_k,), jnp.float32),
        "wk": jax.random.normal(ks[1], (h * d_k, d_model), jnp.float32) * std,
        "bk": jnp.zeros((h * d_k,), jnp.float32),
        "wv": jax.random.normal(ks[2], (h * d_v, d_v), jnp.float32) * std,
        "bv": jnp.zeros((h * d_v,), jnp.float32),
        "wo": jax.random.normal(ks[3], (d_model, h * d_v), jnp.float32) * std,
        "bo": jnp.zeros((d_model,), jnp.float32),
    }


# Pure-JAX reference (mirrors the PyTorch forward), for the sanity check only.
def reference(params, queries, keys, values, d_k, d_v, h):
    b_s, nq, d_model = queries.shape
    nk = keys.shape[1]
    q = queries @ params["wq"].T + params["bq"]
    k = keys @ params["wk"].T + params["bk"]
    v = values @ params["wv"].T + params["bv"]
    q = q.reshape(b_s, nq, h, d_k).transpose(0, 2, 1, 3)
    k = k.reshape(b_s, nk, h, d_k).transpose(0, 2, 3, 1)
    v = v.reshape(b_s, nk, h, d_v).transpose(0, 2, 1, 3)
    att = (q @ k) / jnp.sqrt(jnp.float32(d_k))
    att = jax.nn.softmax(att, axis=-1)
    out = (att @ v).transpose(0, 2, 1, 3).reshape(b_s, nq, h * d_v)
    return out @ params["wo"].T + params["bo"]


if __name__ == "__main__":
    # Small shapes consistent with the module (values last dim must equal d_v).
    b_s, nq, nk = 2, 8, 8
    d_model, d_k, d_v, h = 32, 16, 32, 4

    key = jax.random.PRNGKey(0)
    kp, kq, kk, kv = jax.random.split(key, 4)
    params = init_params(kp, d_model, d_k, d_v, h)

    queries = jax.random.normal(kq, (b_s, nq, d_model), jnp.float32)
    keys = jax.random.normal(kk, (b_s, nk, d_model), jnp.float32)
    values = jax.random.normal(kv, (b_s, nk, d_v), jnp.float32)

    out = scaled_dot_product_attention(params, queries, keys, values, d_k, d_v, h)
    out = jax.block_until_ready(out)

    ref = reference(params, queries, keys, values, d_k, d_v, h)
    assert out.shape == (b_s, nq, d_model)
    # rtol relaxed slightly for the EUP approximate-reciprocal softmax denominator.
    assert jnp.allclose(out, ref, atol=1e-5, rtol=1e-3), (
        float(jnp.max(jnp.abs(out - ref))))

    print("KERNEL_OK")
</pallas_src>

<mosaic_0001>
module attributes {stable_mosaic.version = 11 : i64} {
  func.func @fused_attention_kernel(%arg0: i32, %arg1: i32, %arg2: memref<1x8x32xf32, #tpu.memory_space<vmem>>, %arg3: memref<1x8x32xf32, #tpu.memory_space<vmem>>, %arg4: memref<1x8x32xf32, #tpu.memory_space<vmem>>, %arg5: memref<64x32xf32, #tpu.memory_space<vmem>>, %arg6: memref<1x64xf32, #tpu.memory_space<vmem>>, %arg7: memref<64x32xf32, #tpu.memory_space<vmem>>, %arg8: memref<1x64xf32, #tpu.memory_space<vmem>>, %arg9: memref<128x32xf32, #tpu.memory_space<vmem>>, %arg10: memref<1x128xf32, #tpu.memory_space<vmem>>, %arg11: memref<32x128xf32, #tpu.memory_space<vmem>>, %arg12: memref<1x32xf32, #tpu.memory_space<vmem>>, %arg13: memref<1x8x32xf32, #tpu.memory_space<vmem>>, %arg14: memref<8x64xf32, #tpu.memory_space<vmem>>, %arg15: memref<8x128xf32, #tpu.memory_space<vmem>>) attributes {dimension_semantics = [#tpu.dimension_semantics<parallel>, #tpu.dimension_semantics<arbitrary>], iteration_bounds = array<i64: 2, 1>, scalar_prefetch = 0 : i64, scratch_operands = 2 : i64, tpu.core_type = #tpu.core_type<tc>, window_params = [{transform_indices = @transform_0, window_bounds = array<i64: 1, 8, 32>}, {transform_indices = @transform_1, window_bounds = array<i64: 1, 8, 32>}, {transform_indices = @transform_2, window_bounds = array<i64: 1, 8, 32>}, {pipeline_mode = #tpu.pipeline_mode<synchronous>, transform_indices = @transform_3, window_bounds = array<i64: 64, 32>}, {pipeline_mode = #tpu.pipeline_mode<synchronous>, transform_indices = @transform_4, window_bounds = array<i64: 1, 64>}, {pipeline_mode = #tpu.pipeline_mode<synchronous>, transform_indices = @transform_5, window_bounds = array<i64: 64, 32>}, {pipeline_mode = #tpu.pipeline_mode<synchronous>, transform_indices = @transform_6, window_bounds = array<i64: 1, 64>}, {pipeline_mode = #tpu.pipeline_mode<synchronous>, transform_indices = @transform_7, window_bounds = array<i64: 128, 32>}, {pipeline_mode = #tpu.pipeline_mode<synchronous>, transform_indices = @transform_8, window_bounds = array<i64: 1, 128>}, {pipeline_mode = #tpu.pipeline_mode<synchronous>, transform_indices = @transform_9, window_bounds = array<i64: 32, 128>}, {pipeline_mode = #tpu.pipeline_mode<synchronous>, transform_indices = @transform_10, window_bounds = array<i64: 1, 32>}, {transform_indices = @transform_11, window_bounds = array<i64: 1, 8, 32>}]} {
    %c0_i32 = arith.constant 0 : i32
    %0 = arith.cmpi eq, %arg1, %c0_i32 : i32
    %1 = arith.extui %0 : i1 to i32
    %c0_i32_0 = arith.constant 0 : i32
    %2 = arith.cmpi ne, %1, %c0_i32_0 : i32
    scf.if %2 {
      %c0_36 = arith.constant 0 : index
      %c0_37 = arith.constant 0 : index
      %c0_38 = arith.constant 0 : index
      %83 = vector.load %arg3[%c0_36, %c0_37, %c0_38] : memref<1x8x32xf32, #tpu.memory_space<vmem>>, vector<1x8x32xf32>
      %84 = vector.shape_cast %83 : vector<1x8x32xf32> to vector<8x32xf32>
      %c0_39 = arith.constant 0 : index
      %c0_40 = arith.constant 0 : index
      %c0_41 = arith.constant 0 : index
      %85 = vector.load %arg4[%c0_39, %c0_40, %c0_41] : memref<1x8x32xf32, #tpu.memory_space<vmem>>, vector<1x8x32xf32>
      %86 = vector.shape_cast %85 : vector<1x8x32xf32> to vector<8x32xf32>
      %c0_42 = arith.constant 0 : index
      %c0_43 = arith.constant 0 : index
      %87 = vector.load %arg7[%c0_42, %c0_43] : memref<64x32xf32, #tpu.memory_space<vmem>>, vector<64x32xf32>
      %cst_44 = arith.constant dense<0.000000e+00> : vector<8x64xf32>
      %88 = tpu.matmul %84, %87, %cst_44 {dimension_numbers = #tpu.dot_dimension_numbers<[1], [1], [0], [0], [0, 0, 1, 0], [], []>} : vector<8x32xf32>, vector<64x32xf32>, vector<8x64xf32> -> vector<8x64xf32>
      %c0_45 = arith.constant 0 : index
      %c0_46 = arith.constant 0 : index
      %89 = vector.load %arg8[%c0_45, %c0_46] : memref<1x64xf32, #tpu.memory_space<vmem>>, vector<1x64xf32>
      %90 = vector.broadcast %89 : vector<1x64xf32> to vector<8x64xf32>
      %91 = arith.addf %88, %90 : vector<8x64xf32>
      %c0_47 = arith.constant 0 : index
      %c0_48 = arith.constant 0 : index
      %92 = vector.load %arg14[%c0_47, %c0_48] : memref<8x64xf32, #tpu.memory_space<vmem>>, vector<8x64xf32>
      tpu.vector_store %arg14[%c0_47, %c0_48], %91 {strides = array<i32>} : memref<8x64xf32, #tpu.memory_space<vmem>>, vector<8x64xf32>,
      %c0_49 = arith.constant 0 : index
      %c0_50 = arith.constant 0 : index
      %93 = vector.load %arg9[%c0_49, %c0_50] : memref<128x32xf32, #tpu.memory_space<vmem>>, vector<128x32xf32>
      %cst_51 = arith.constant dense<0.000000e+00> : vector<8x128xf32>
      %94 = tpu.matmul %86, %93, %cst_51 {dimension_numbers = #tpu.dot_dimension_numbers<[1], [1], [0], [0], [0, 0, 1, 0], [], []>} : vector<8x32xf32>, vector<128x32xf32>, vector<8x128xf32> -> vector<8x128xf32>
      %c0_52 = arith.constant 0 : index
      %c0_53 = arith.constant 0 : index
      %95 = vector.load %arg10[%c0_52, %c0_53] : memref<1x128xf32, #tpu.memory_space<vmem>>, vector<1x128xf32>
      %96 = vector.broadcast %95 : vector<1x128xf32> to vector<8x128xf32>
      %97 = arith.addf %94, %96 : vector<8x128xf32>
      %c0_54 = arith.constant 0 : index
      %c0_55 = arith.constant 0 : index
      %98 = vector.load %arg15[%c0_54, %c0_55] : memref<8x128xf32, #tpu.memory_space<vmem>>, vector<8x128xf32>
      tpu.vector_store %arg15[%c0_54, %c0_55], %97 {strides = array<i32>} : memref<8x128xf32, #tpu.memory_space<vmem>>, vector<8x128xf32>,
    } else {
    }
    %c0 = arith.constant 0 : index
    %c0_1 = arith.constant 0 : index
    %c0_2 = arith.constant 0 : index
    %3 = vector.load %arg2[%c0, %c0_1, %c0_2] : memref<1x8x32xf32, #tpu.memory_space<vmem>>, vector<1x8x32xf32>
    %4 = vector.shape_cast %3 : vector<1x8x32xf32> to vector<8x32xf32>
    %c0_3 = arith.constant 0 : index
    %c0_4 = arith.constant 0 : index
    %5 = vector.load %arg5[%c0_3, %c0_4] : memref<64x32xf32, #tpu.memory_space<vmem>>, vector<64x32xf32>
    %cst = arith.constant dense<0.000000e+00> : vector<8x64xf32>
    %6 = tpu.matmul %4, %5, %cst {dimension_numbers = #tpu.dot_dimension_numbers<[1], [1], [0], [0], [0, 0, 1, 0], [], []>} : vector<8x32xf32>, vector<64x32xf32>, vector<8x64xf32> -> vector<8x64xf32>
    %c0_5 = arith.constant 0 : index
    %c0_6 = arith.constant 0 : index
    %7 = vector.load %arg6[%c0_5, %c0_6] : memref<1x64xf32, #tpu.memory_space<vmem>>, vector<1x64xf32>
    %8 = vector.broadcast %7 : vector<1x64xf32> to vector<8x64xf32>
    %9 = arith.addf %6, %8 : vector<8x64xf32>
    %cst_7 = arith.constant 2.500000e-01 : f32
    %10 = vector.broadcast %cst_7 : f32 to vector<8x64xf32>
    %11 = arith.mulf %9, %10 : vector<8x64xf32>
    %c0_8 = arith.constant 0 : index
    %c0_9 = arith.constant 0 : index
    %12 = vector.load %arg14[%c0_8, %c0_9] : memref<8x64xf32, #tpu.memory_space<vmem>>, vector<8x64xf32>
    %c0_10 = arith.constant 0 : index
    %c0_11 = arith.constant 0 : index
    %13 = vector.load %arg15[%c0_10, %c0_11] : memref<8x128xf32, #tpu.memory_space<vmem>>, vector<8x128xf32>
    %14 = vector.extract_strided_slice %11 {offsets = [0, 0], sizes = [8, 16], strides = [1, 1]} : vector<8x64xf32> to vector<8x16xf32>
    %15 = vector.extract_strided_slice %12 {offsets = [0, 0], sizes = [8, 16], strides = [1, 1]} : vector<8x64xf32> to vector<8x16xf32>
    %16 = vector.extract_strided_slice %13 {offsets = [0, 0], sizes = [8, 32], strides = [1, 1]} : vector<8x128xf32> to vector<8x32xf32>
    %cst_12 = arith.constant dense<0.000000e+00> : vector<8x8xf32>
    %17 = tpu.matmul %14, %15, %cst_12 {dimension_numbers = #tpu.dot_dimension_numbers<[1], [1], [0], [0], [0, 0, 1, 0], [], []>} : vector<8x16xf32>, vector<8x16xf32>, vector<8x8xf32> -> vector<8x8xf32>
    %cst_13 = arith.constant dense<0xFF800000> : vector<8xf32>
    %18 = vector.multi_reduction <maximumf>, %17, %cst_13 [1] : vector<8x8xf32> to vector<8xf32>
    %19 = vector.shape_cast %18 : vector<8xf32> to vector<8x1xf32>
    %20 = vector.broadcast %19 : vector<8x1xf32> to vector<8x8xf32>
    %21 = arith.subf %17, %20 : vector<8x8xf32>
    %22 = math.exp %21 : vector<8x8xf32>
    %cst_14 = arith.constant dense<0.000000e+00> : vector<8xf32>
    %23 = vector.multi_reduction <add>, %22, %cst_14 [1] : vector<8x8xf32> to vector<8xf32>
    %24 = vector.shape_cast %23 : vector<8xf32> to vector<8x1xf32>
    %25 = tpu.reciprocal %24 {approx = true} : vector<8x1xf32> -> vector<8x1xf32>
    %26 = vector.broadcast %25 : vector<8x1xf32> to vector<8x8xf32>
    %27 = arith.mulf %22, %26 : vector<8x8xf32>
    %cst_15 = arith.constant dense<0.000000e+00> : vector<8x32xf32>
    %28 = tpu.matmul %27, %16, %cst_15 {dimension_numbers = #tpu.dot_dimension_numbers<[1], [0], [0], [1], [0, 0, 1, 1], [], []>} : vector<8x8xf32>, vector<8x32xf32>, vector<8x32xf32> -> vector<8x32xf32>
    %29 = vector.extract_strided_slice %11 {offsets = [0, 16], sizes = [8, 16], strides = [1, 1]} : vector<8x64xf32> to vector<8x16xf32>
    %30 = vector.extract_strided_slice %12 {offsets = [0, 16], sizes = [8, 16], strides = [1, 1]} : vector<8x64xf32> to vector<8x16xf32>
    %31 = vector.extract_strided_slice %13 {offsets = [0, 32], sizes = [8, 32], strides = [1, 1]} : vector<8x128xf32> to vector<8x32xf32>
    %cst_16 = arith.constant dense<0.000000e+00> : vector<8x8xf32>
    %32 = tpu.matmul %29, %30, %cst_16 {dimension_numbers = #tpu.dot_dimension_numbers<[1], [1], [0], [0], [0, 0, 1, 0], [], []>} : vector<8x16xf32>, vector<8x16xf32>, vector<8x8xf32> -> vector<8x8xf32>
    %cst_17 = arith.constant dense<0xFF800000> : vector<8xf32>
    %33 = vector.multi_reduction <maximumf>, %32, %cst_17 [1] : vector<8x8xf32> to vector<8xf32>
    %34 = vector.shape_cast %33 : vector<8xf32> to vector<8x1xf32>
    %35 = vector.broadcast %34 : vector<8x1xf32> to vector<8x8xf32>
    %36 = arith.subf %32, %35 : vector<8x8xf32>
    %37 = math.exp %36 : vector<8x8xf32>
    %cst_18 = arith.constant dense<0.000000e+00> : vector<8xf32>
    %38 = vector.multi_reduction <add>, %37, %cst_18 [1] : vector<8x8xf32> to vector<8xf32>
    %39 = vector.shape_cast %38 : vector<8xf32> to vector<8x1xf32>
    %40 = tpu.reciprocal %39 {approx = true} : vector<8x1xf32> -> vector<8x1xf32>
    %41 = vector.broadcast %40 : vector<8x1xf32> to vector<8x8xf32>
    %42 = arith.mulf %37, %41 : vector<8x8xf32>
    %cst_19 = arith.constant dense<0.000000e+00> : vector<8x32xf32>
    %43 = tpu.matmul %42, %31, %cst_19 {dimension_numbers = #tpu.dot_dimension_numbers<[1], [0], [0], [1], [0, 0, 1, 1], [], []>} : vector<8x8xf32>, vector<8x32xf32>, vector<8x32xf32> -> vector<8x32xf32>
    %44 = vector.extract_strided_slice %11 {offsets = [0, 32], sizes = [8, 16], strides = [1, 1]} : vector<8x64xf32> to vector<8x16xf32>
    %45 = vector.extract_strided_slice %12 {offsets = [0, 32], sizes = [8, 16], strides = [1, 1]} : vector<8x64xf32> to vector<8x16xf32>
    %46 = vector.extract_strided_slice %13 {offsets = [0, 64], sizes = [8, 32], strides = [1, 1]} : vector<8x128xf32> to vector<8x32xf32>
    %cst_20 = arith.constant dense<0.000000e+00> : vector<8x8xf32>
    %47 = tpu.matmul %44, %45, %cst_20 {dimension_numbers = #tpu.dot_dimension_numbers<[1], [1], [0], [0], [0, 0, 1, 0], [], []>} : vector<8x16xf32>, vector<8x16xf32>, vector<8x8xf32> -> vector<8x8xf32>
    %cst_21 = arith.constant dense<0xFF800000> : vector<8xf32>
    %48 = vector.multi_reduction <maximumf>, %47, %cst_21 [1] : vector<8x8xf32> to vector<8xf32>
    %49 = vector.shape_cast %48 : vector<8xf32> to vector<8x1xf32>
    %50 = vector.broadcast %49 : vector<8x1xf32> to vector<8x8xf32>
    %51 = arith.subf %47, %50 : vector<8x8xf32>
    %52 = math.exp %51 : vector<8x8xf32>
    %cst_22 = arith.constant dense<0.000000e+00> : vector<8xf32>
    %53 = vector.multi_reduction <add>, %52, %cst_22 [1] : vector<8x8xf32> to vector<8xf32>
    %54 = vector.shape_cast %53 : vector<8xf32> to vector<8x1xf32>
    %55 = tpu.reciprocal %54 {approx = true} : vector<8x1xf32> -> vector<8x1xf32>
    %56 = vector.broadcast %55 : vector<8x1xf32> to vector<8x8xf32>
    %57 = arith.mulf %52, %56 : vector<8x8xf32>
    %cst_23 = arith.constant dense<0.000000e+00> : vector<8x32xf32>
    %58 = tpu.matmul %57, %46, %cst_23 {dimension_numbers = #tpu.dot_dimension_numbers<[1], [0], [0], [1], [0, 0, 1, 1], [], []>} : vector<8x8xf32>, vector<8x32xf32>, vector<8x32xf32> -> vector<8x32xf32>
    %59 = vector.extract_strided_slice %11 {offsets = [0, 48], sizes = [8, 16], strides = [1, 1]} : vector<8x64xf32> to vector<8x16xf32>
    %60 = vector.extract_strided_slice %12 {offsets = [0, 48], sizes = [8, 16], strides = [1, 1]} : vector<8x64xf32> to vector<8x16xf32>
    %61 = vector.extract_strided_slice %13 {offsets = [0, 96], sizes = [8, 32], strides = [1, 1]} : vector<8x128xf32> to vector<8x32xf32>
    %cst_24 = arith.constant dense<0.000000e+00> : vector<8x8xf32>
    %62 = tpu.matmul %59, %60, %cst_24 {dimension_numbers = #tpu.dot_dimension_numbers<[1], [1], [0], [0], [0, 0, 1, 0], [], []>} : vector<8x16xf32>, vector<8x16xf32>, vector<8x8xf32> -> vector<8x8xf32>
    %cst_25 = arith.constant dense<0xFF800000> : vector<8xf32>
    %63 = vector.multi_reduction <maximumf>, %62, %cst_25 [1] : vector<8x8xf32> to vector<8xf32>
    %64 = vector.shape_cast %63 : vector<8xf32> to vector<8x1xf32>
    %65 = vector.broadcast %64 : vector<8x1xf32> to vector<8x8xf32>
    %66 = arith.subf %62, %65 : vector<8x8xf32>
    %67 = math.exp %66 : vector<8x8xf32>
    %cst_26 = arith.constant dense<0.000000e+00> : vector<8xf32>
    %68 = vector.multi_reduction <add>, %67, %cst_26 [1] : vector<8x8xf32> to vector<8xf32>
    %69 = vector.shape_cast %68 : vector<8xf32> to vector<8x1xf32>
    %70 = tpu.reciprocal %69 {approx = true} : vector<8x1xf32> -> vector<8x1xf32>
    %71 = vector.broadcast %70 : vector<8x1xf32> to vector<8x8xf32>
    %72 = arith.mulf %67, %71 : vector<8x8xf32>
    %cst_27 = arith.constant dense<0.000000e+00> : vector<8x32xf32>
    %73 = tpu.matmul %72, %61, %cst_27 {dimension_numbers = #tpu.dot_dimension_numbers<[1], [0], [0], [1], [0, 0, 1, 1], [], []>} : vector<8x8xf32>, vector<8x32xf32>, vector<8x32xf32> -> vector<8x32xf32>
    %74 = tpu.concatenate %28, %43, %58, %73 in 1 : vector<8x32xf32>, vector<8x32xf32>, vector<8x32xf32>, vector<8x32xf32> -> vector<8x128xf32>
    %c0_28 = arith.constant 0 : index
    %c0_29 = arith.constant 0 : index
    %75 = vector.load %arg11[%c0_28, %c0_29] : memref<32x128xf32, #tpu.memory_space<vmem>>, vector<32x128xf32>
    %cst_30 = arith.constant dense<0.000000e+00> : vector<8x32xf32>
    %76 = tpu.matmul %74, %75, %cst_30 {dimension_numbers = #tpu.dot_dimension_numbers<[1], [1], [0], [0], [0, 0, 1, 0], [], []>} : vector<8x128xf32>, vector<32x128xf32>, vector<8x32xf32> -> vector<8x32xf32>
    %c0_31 = arith.constant 0 : index
    %c0_32 = arith.constant 0 : index
    %77 = vector.load %arg12[%c0_31, %c0_32] : memref<1x32xf32, #tpu.memory_space<vmem>>, vector<1x32xf32>
    %78 = vector.broadcast %77 : vector<1x32xf32> to vector<8x32xf32>
    %79 = arith.addf %76, %78 : vector<8x32xf32>
    %c0_33 = arith.constant 0 : index
    %c0_34 = arith.constant 0 : index
    %c0_35 = arith.constant 0 : index
    %80 = vector.load %arg13[%c0_33, %c0_34, %c0_35] : memref<1x8x32xf32, #tpu.memory_space<vmem>>, vector<1x8x32xf32>
    %81 = vector.shape_cast %80 : vector<1x8x32xf32> to vector<8x32xf32>
    %82 = vector.shape_cast %79 : vector<8x32xf32> to vector<1x8x32xf32>
    tpu.vector_store %arg13[%c0_33, %c0_34, %c0_35], %82 {strides = array<i32>} : memref<1x8x32xf32, #tpu.memory_space<vmem>>, vector<1x8x32xf32>,
    return
  }
  func.func @transform_0(%arg0: i32, %arg1: i32) -> (i32, i32, i32) {
    %c0_i32 = arith.constant 0 : i32
    %c0_i32_0 = arith.constant 0 : i32
    return %arg0, %arg1, %c0_i32 : i32, i32, i32
  }
  func.func @transform_1(%arg0: i32, %arg1: i32) -> (i32, i32, i32) {
    %c0_i32 = arith.constant 0 : i32
    %c0_i32_0 = arith.constant 0 : i32
    %c0_i32_1 = arith.constant 0 : i32
    return %arg0, %c0_i32, %c0_i32_0 : i32, i32, i32
  }
  func.func @transform_2(%arg0: i32, %arg1: i32) -> (i32, i32, i32) {
    %c0_i32 = arith.constant 0 : i32
    %c0_i32_0 = arith.constant 0 : i32
    %c0_i32_1 = arith.constant 0 : i32
    return %arg0, %c0_i32, %c0_i32_0 : i32, i32, i32
  }
  func.func @transform_3(%arg0: i32, %arg1: i32) -> (i32, i32) {
    %c0_i32 = arith.constant 0 : i32
    %c0_i32_0 = arith.constant 0 : i32
    %c0_i32_1 = arith.constant 0 : i32
    return %c0_i32, %c0_i32_0 : i32, i32
  }
  func.func @transform_4(%arg0: i32, %arg1: i32) -> (i32, i32) {
    %c0_i32 = arith.constant 0 : i32
    %c0_i32_0 = arith.constant 0 : i32
    %c0_i32_1 = arith.constant 0 : i32
    return %c0_i32, %c0_i32_0 : i32, i32
  }
  func.func @transform_5(%arg0: i32, %arg1: i32) -> (i32, i32) {
    %c0_i32 = arith.constant 0 : i32
    %c0_i32_0 = arith.constant 0 : i32
    %c0_i32_1 = arith.constant 0 : i32
    return %c0_i32, %c0_i32_0 : i32, i32
  }
  func.func @transform_6(%arg0: i32, %arg1: i32) -> (i32, i32) {
    %c0_i32 = arith.constant 0 : i32
    %c0_i32_0 = arith.constant 0 : i32
    %c0_i32_1 = arith.constant 0 : i32
    return %c0_i32, %c0_i32_0 : i32, i32
  }
  func.func @transform_7(%arg0: i32, %arg1: i32) -> (i32, i32) {
    %c0_i32 = arith.constant 0 : i32
    %c0_i32_0 = arith.constant 0 : i32
    %c0_i32_1 = arith.constant 0 : i32
    return %c0_i32, %c0_i32_0 : i32, i32
  }
  func.func @transform_8(%arg0: i32, %arg1: i32) -> (i32, i32) {
    %c0_i32 = arith.constant 0 : i32
    %c0_i32_0 = arith.constant 0 : i32
    %c0_i32_1 = arith.constant 0 : i32
    return %c0_i32, %c0_i32_0 : i32, i32
  }
  func.func @transform_9(%arg0: i32, %arg1: i32) -> (i32, i32) {
    %c0_i32 = arith.constant 0 : i32
    %c0_i32_0 = arith.constant 0 : i32
    %c0_i32_1 = arith.constant 0 : i32
    return %c0_i32, %c0_i32_0 : i32, i32
  }
  func.func @transform_10(%arg0: i32, %arg1: i32) -> (i32, i32) {
    %c0_i32 = arith.constant 0 : i32
    %c0_i32_0 = arith.constant 0 : i32
    %c0_i32_1 = arith.constant 0 : i32
    return %c0_i32, %c0_i32_0 : i32, i32
  }
  func.func @transform_11(%arg0: i32, %arg1: i32) -> (i32, i32, i32) {
    %c0_i32 = arith.constant 0 : i32
    %c0_i32_0 = arith.constant 0 : i32
    return %arg0, %arg1, %c0_i32 : i32, i32, i32
  }
}

</mosaic_0001>

<bundles_post_ra>
// kernel: tpu_custom_call.1
= control target key start
LH: loop header
LB: loop body
LE: loop exit
PB: predicated region body
PF: predicated region fallthrough
CT: control target
= control target key end

     0   :  { %s2608_s0 = inlined_call_operand.vmem [shape: f32[2,8,32], index: 0, kind: input, shape index: {}]   ;;  %s2609_s1 = inlined_call_operand.vmem [shape: f32[2,8,32], index: 1, kind: input, shape index: {}]   ;;  %s2610_s2 = inlined_call_operand.vmem [shape: f32[2,8,32], index: 2, kind: input, shape index: {}]   ;;  %s2611_s3 = inlined_call_operand.vmem [shape: f32[64,32], index: 3, kind: input, shape index: {}]   ;;  %s2612_s4 = inlined_call_operand.vmem [shape: f32[1,64], index: 4, kind: input, shape index: {}]   ;;  %s2613_s5 = inlined_call_operand.vmem [shape: f32[64,32], index: 5, kind: input, shape index: {}]   ;;  %s2614_s6 = inlined_call_operand.vmem [shape: f32[1,64], index: 6, kind: input, shape index: {}]   ;;  %s2615_s7 = inlined_call_operand.vmem [shape: f32[128,32], index: 7, kind: input, shape index: {}]   ;;  %s2616_s8 = inlined_call_operand.vmem [shape: f32[1,128], index: 8, kind: input, shape index: {}]   ;;  %s2617_s9 = inlined_call_operand.vmem [shape: f32[32,128], index: 9, kind: input, shape index: {}]   ;;  %s2618_s10 = inlined_call_operand.vmem [shape: f32[1,32], index: 10, kind: input, shape index: {}]   ;;  %s2619_s11 = inlined_call_operand.hbm [shape: f32[2,8,32], index: 11, kind: output, shape index: {}]  }
   0x1   :  { %2621 = sst [smem:[#allocation8_spill]] %s2613_s5 }
   0x2   :  { %16 = vsyncpa [#allocation5], 0 }
   0x3   :  { %18 = vsyncpa [#allocation5 + $0x1], 0  ;;  %s2233_s17 = smov 0   ;;  %s2235_s18 = smov 0  }
   0x4   :  { %s2237_s19 = smov 0   ;;  %s2239_s20 = smov 0  }
   0x5   :  { %s2241_s21 = smov 0   ;;  %s2243_s22 = smov 0  }
   0x6 LB: > { %s1691_s23 = sadd.s32 4294967295, %s2162_s22   ;;  %s1692_s24 = sadd.s32 4294967294, %s2162_s22   ;;  %s2162_s22 = sphi %s2243_s22, %s24_s22   ;;  %s2158_s21 = sphi %s2241_s21, %s2633_s21   ;;  %s2154_s20 = sphi %s2239_s20, %s2632_s20   ;;  %s2150_s19 = sphi %s2237_s19, %s2631_s19   ;;  %s2146_s18 = sphi %s2235_s18, %s2630_s18   ;;  %s2142_s17 = sphi %s2233_s17, %s2629_s17  }
   0x7   : > { %s36_s25 = sadd.s32 1, %s2158_s21  ;;  %s293_s26 = sadd.s32 1, %s2150_s19 }
   0x8   : > { %p38_p0 = scmp.ge.s32.totalorder %s36_s25, 2  ;;  %p303_p1 = scmp.ne.s32.totalorder %s2150_s19, %s2146_s18 }
   0x9   : > { %p304_p2 = scmp.eq.s32.totalorder %s1691_s23, 1  ;;  %p309_p3 = scmp.ne.s32.totalorder %s2146_s18, %s2142_s17 }
   0xa   : > { %s2635_s25 = smov (%p38_p0, %s36_s25), 0  ;;  %p310_p5 = scmp.eq.s32.totalorder %s1692_s24, 1 }
   0xb   : > { %2622 = sst [smem:[#allocation7_spill]] %s2635_s25  ;;  %p2273_p4 = por %p304_p2, %p303_p1 }
   0xc   : > { %s288_s28 = ssub.s32 %s2158_s21, %s2635_s25  ;;  %p1695_p6 = scmp.ge.s32.totalorder %s2162_s22, 1 }
   0xd   : > { %p291_p7 = scmp.eq.s32.totalorder %s288_s28, 0  ;;  %p2280_p8 = por %p310_p5, %p309_p3 }
   0xe   : > { %p376_p9 = scmp.lt.s32.totalorder %s2162_s22, 3 }
   0xf   : > { %s2286_s30 = scalar_select %p291_p7, %s2150_s19, %s293_s26  }
  0x10   : > { %p377_p10 = pnand %p1695_p6, %p376_p9 }
  0x11   : > { %s2625_s5 = sld [smem:[#allocation8_spill]] (!%p377_p10)  ;;  %vm462_vm0 = vcmask (!%p377_p10), 261120   ;;  %v2164_v2 = vmov (!%p377_p10), 0.0|0.0   ;;  %vm2165_vm2 = vmmov (!%p377_p10), 0   ;;  %v2166_v5 = vmov (!%p377_p10), 0.0   ;;  %v562_v8 = vld [vmem:[%s2615_s7] sm:$0xff] (!%p377_p10) }
  0x12   : > { %380 = sbr.rel (%p377_p10) target bundleno = 1982 (0x7be), region = 64  ;;  %1935 = vmatprep.subr.bf16.mxu0 (!%p377_p10), %v2164_v2  ;;  %vm2297_vm1 = vmpackc.low (!%p377_p10), %vm462_vm0, %vm462_vm0  ;;  %1951 = vmatprep.subr.bf16.mxu1 (!%p377_p10), %v2164_v2  ;;  %v563_v9 = vld [vmem:[%s2615_s7 + $0x8] sm:$0xff] (!%p377_p10)  ;;  %v564_v12 = vld [vmem:[%s2615_s7 + $0x10] sm:$0xff] (!%p377_p10)  ;;  %p426_p11 = scmp.lt.s32.totalorder (!%p377_p10), %s2154_s20, 1  ;;  %vm560_vm3 = vcmask (!%p377_p10), 523264   ;;  %vm824_vm4 = vcmask (!%p377_p10), 130048  }
  0x13   : > { %1827 = vmatprep.mubr.msk.f32.mxu0 (!%p377_p10), %vm2165_vm2, %v2166_v5  ;;  %1862 = vmatprep.mubr.msk.f32.mxu1 (!%p377_p10), %vm2165_vm2, %v2166_v5  ;;  %v1952_v11 = vpack.c.bf16 (!%p377_p10), %v563_v9, %v562_v8  ;;  %v565_v13 = vld [vmem:[%s2615_s7 + $0x18] sm:$0xff] (!%p377_p10)  ;;  %v566_v18 = vld [vmem:[%s2615_s7 + $0x20] sm:$0xff] (!%p377_p10)  ;;  %v567_v19 = vld [vmem:[%s2615_s7 + $0x28] sm:$0xff] (!%p377_p10)  ;;  %s2169_s15 = smov (!%p377_p10), 80   ;;  %vm901_vm5 = vcmask (!%p377_p10), 64512   ;;  %vm1497_vm6 = vcmask (!%p377_p10), 785408  }
  0x14   : > { %v1956_v16 = vpack.c.bf16 (!%p377_p10), %v565_v13, %v564_v12  ;;  %v1960_v22 = vpack.c.bf16 (!%p377_p10), %v567_v19, %v566_v18  ;;  %v568_v24 = vld [vmem:[%s2615_s7 + $0x30] sm:$0xff] (!%p377_p10)  ;;  %v569_v25 = vld [vmem:[%s2615_s7 + $0x38] sm:$0xff] (!%p377_p10)  ;;  %v708_v26 = vld [vmem:[%s2611_s3] sm:$0xff] (!%p377_p10) }
  0x15   : > { %1954 = vmatpush3.bf16.xpose.msk.msra.mxu1 (!%p377_p10), %vm2297_vm1, %v1952_v11  ;;  %v709_v27 = vld [vmem:[%s2611_s3 + $0x8] sm:$0xff] (!%p377_p10)  ;;  %v1964_v28 = vpack.c.bf16 (!%p377_p10), %v569_v25, %v568_v24  ;;  %v570_v31 = vld [vmem:[%s2615_s7 + $0x40] sm:$0xff] (!%p377_p10)  ;;  %v710_v33 = vld [vmem:[%s2611_s3 + $0x10] sm:$0xff] (!%p377_p10) }
  0x16   : > { %1955 = vmatprep.subr.bf16.mxu1 (!%p377_p10), %v2164_v2  ;;  %v1984_v30 = vpack.c.bf16 (!%p377_p10), %v709_v27, %v708_v26  ;;  %v571_v32 = vld [vmem:[%s2615_s7 + $0x48] sm:$0xff] (!%p377_p10)  ;;  %v711_v34 = vld [vmem:[%s2611_s3 + $0x18] sm:$0xff] (!%p377_p10)  ;;  %v572_v37 = vld [vmem:[%s2615_s7 + $0x50] sm:$0xff] (!%p377_p10) }
  0x17   : > { %v447_v0 = vld [vmem:[%s2625_s5] sm:$0xff] (!%p377_p10)  ;;  %v448_v1 = vld [vmem:[%s2625_s5 + $0x8] sm:$0xff] (!%p377_p10)  ;;  %v449_v6 = vld [vmem:[%s2625_s5 + $0x10] sm:$0xff] (!%p377_p10)  ;;  %v1968_v35 = vpack.c.bf16 (!%p377_p10), %v571_v32, %v570_v31  ;;  %v1988_v36 = vpack.c.bf16 (!%p377_p10), %v711_v34, %v710_v33 }
  0x18   : > { %v1936_v3 = vpack.c.bf16 (!%p377_p10), %v448_v1, %v447_v0  ;;  %v450_v7 = vld [vmem:[%s2625_s5 + $0x18] sm:$0xff] (!%p377_p10)  ;;  %v451_v14 = vld [vmem:[%s2625_s5 + $0x20] sm:$0xff] (!%p377_p10)  ;;  %v452_v15 = vld [vmem:[%s2625_s5 + $0x28] sm:$0xff] (!%p377_p10) }
  0x19   : > { %v1940_v10 = vpack.c.bf16 %v450_v7, %v449_v6  ;;  %v1944_v17 = vpack.c.bf16 %v452_v15, %v451_v14  ;;  %v453_v20 = vld [vmem:[%s2625_s5 + $0x30] sm:$0xff]  ;;  %v454_v21 = vld [vmem:[%s2625_s5 + $0x38] sm:$0xff]  ;;  %s427_s13 = scalar_select %p426_p11, %s2154_s20, 1  ;;  %v712_v39 = vld [vmem:[%s2611_s3 + $0x20] sm:$0xff] }
  0x1a   : > { %1938 = vmatpush3.bf16.xpose.msk.msra.mxu0 %vm2297_vm1, %v1936_v3  ;;  %v1948_v23 = vpack.c.bf16 %v454_v21, %v453_v20  ;;  %v573_v38 = vld [vmem:[%s2615_s7 + $0x58] sm:$0xff]  ;;  %v713_v40 = vld [vmem:[%s2611_s3 + $0x28] sm:$0xff]  ;;  %v574_v43 = vld [vmem:[%s2615_s7 + $0x60] sm:$0xff]  ;;  %s2170_s5 = smov 64  }
  0x1b   : > { %1939 = vmatprep.subr.bf16.mxu0 %v2164_v2  ;;  %s2359_s14 = sshll.u32 %s427_s13, 3  ;;  %v1972_v41 = vpack.c.bf16 %v573_v38, %v572_v37  ;;  %v1992_v42 = vpack.c.bf16 %v713_v40, %v712_v39  ;;  %v575_v44 = vld [vmem:[%s2615_s7 + $0x68] sm:$0xff]  ;;  %v714_v45 = vld [vmem:[%s2611_s3 + $0x30] sm:$0xff]  ;;  %v715_v46 = vld [vmem:[%s2611_s3 + $0x38] sm:$0xff]  ;;  %s2168_s13 = smov 96  }
  0x1c   : > { %s436_s12 = scalar_lea.vmem %s2609_s1, %s2359_s14  ;;  %v1976_v47 = vpack.c.bf16 %v575_v44, %v574_v43  ;;  %v1996_v48 = vpack.c.bf16 %v715_v46, %v714_v45  ;;  %s432_s28 = scalar_lea.vmem %s2608_s0, %s2359_s14  ;;  %v576_v50 = vld [vmem:[%s2615_s7 + $0x70] sm:$0xff]  ;;  %v577_v51 = vld [vmem:[%s2615_s7 + $0x78] sm:$0xff]  ;;  %v1700_v54 = vld [vmem:[%s2614_s6] ss:$0 sm:$0xff] }
  0x1d   : > { %1958 = vmatpush3.bf16.xpose.msk.msra.mxu1 %vm2297_vm1, %v1956_v16  ;;  %v445_v29 = vld [vmem:[%s436_s12] sm:$0xff]  ;;  %v1980_v52 = vpack.c.bf16 %v577_v51, %v576_v50  ;;  %s440_s24 = scalar_lea.vmem %s2610_s2, %s2359_s14 }
  0x1e   : > { %1959 = vmatprep.subr.bf16.mxu1 %v2164_v2  ;;  %v707_v49 = vld [vmem:[%s432_s28] sm:$0xff]  ;;  %s2167_s28 = smov 112  }
  0x1f   : > { %v446_v53 = vld [vmem:[%s440_s24] sm:$0xff]  ;;  %s2171_s24 = smov 32  }
  0x20   : > { %v1728_v59 = vld [vmem:[%s2612_s4] ss:$0 sm:$0xff] }
  0x21   : > { %v1710_v0 = vld [vmem:[%s2616_s8] ss:$0 sm:$0xff] }
  0x22   : > { %1942 = vmatpush3.bf16.xpose.msk.msra.mxu0 %vm2297_vm1, %v1940_v10 }
  0x23   : > { %1943 = vmatprep.subr.bf16.mxu0 %v2164_v2 }
  0x25   : > { %1962 = vmatpush3.bf16.xpose.msk.msra.mxu1 %vm2297_vm1, %v1960_v22 }
  0x26   : > { %1963 = vmatprep.subr.bf16.mxu1 %v2164_v2 }
  0x2a   : > { %1946 = vmatpush3.bf16.xpose.msk.msra.mxu0 %vm2297_vm1, %v1944_v17 }
  0x2b   : > { %1947 = vmatprep.subr.bf16.mxu0 %v2164_v2 }
  0x2d   : > { %1966 = vmatpush3.bf16.xpose.msk.msra.mxu1 %vm2297_vm1, %v1964_v28 }
  0x2e   : > { %1967 = vmatprep.subr.bf16.mxu1 %v2164_v2 }
  0x32   : > { %1950 = vmatpush3.bf16.xpose.msk.msra.mxu0 %vm2297_vm1, %v1948_v23 }
  0x33   : > { %1983 = vmatprep.subr.bf16.mxu0 %v2164_v2 }
  0x35   : > { %1970 = vmatpush3.bf16.xpose.msk.msra.mxu1 %vm2297_vm1, %v1968_v35 }
  0x36   : > { %1971 = vmatprep.subr.bf16.mxu1 %v2164_v2 }
  0x39   : > { %1828 = vmatmul.mubr.msk.f32.vlgmr.msra.gmra.mrb[0].mxu0 %vm462_vm0, %v445_v29 }
  0x3a   : > { %1986 = vmatpush3.bf16.xpose.msk.msra.mxu0 %vm2297_vm1, %v1984_v30  ;;  %1881 = vmatprep.mubr.msk.f32.mxu0 %vm2165_vm2, %v2166_v5 }
  0x3b   : > { %1987 = vmatprep.subr.bf16.mxu0 %v2164_v2 }
  0x3d   : > { %1974 = vmatpush3.bf16.xpose.msk.msra.mxu1 %vm2297_vm1, %v1972_v41 }
  0x3e   : > { %1975 = vmatprep.subr.bf16.mxu1 %v2164_v2 }
  0x42   : > { %1990 = vmatpush3.bf16.xpose.msk.msra.mxu0 %vm2297_vm1, %v1988_v36 }
  0x43   : > { %1991 = vmatprep.subr.bf16.mxu0 %v2164_v2 }
  0x45   : > { %1978 = vmatpush3.bf16.xpose.msk.msra.mxu1 %vm2297_vm1, %v1976_v47 }
  0x46   : > { %1979 = vmatprep.subr.bf16.mxu1 %v2164_v2 }
  0x4a   : > { %1994 = vmatpush3.bf16.xpose.msk.msra.mxu0 %vm2297_vm1, %v1992_v42 }
  0x4b   : > { %1995 = vmatprep.subr.bf16.mxu0 %v2164_v2 }
  0x4d   : > { %1982 = vmatpush3.bf16.xpose.msk.msra.mxu1 %vm2297_vm1, %v1980_v52 }
  0x4e   : > { %1884 = vmatprep.subr.mxu1 %v2166_v5 }
  0x52   : > { %1998 = vmatpush3.bf16.xpose.msk.msra.mxu0 %vm2297_vm1, %v1996_v48 }
  0x53   : > { %1904 = vmatprep.subr.mxu0 %v2166_v5 }
  0x54   : > { %1863 = vmatmul.mubr.msk.f32.vlgmr.msra.gmra.mrb[0].mxu1 %vm462_vm0, %v446_v53 }
  0x55   : > { %1886 = vmatprep.mubr.msk.f32.mxu1 %vm2165_vm2, %v2166_v5 }
  0x59   : > { %1882 = vmatmul.mubr.msk.f32.vlgmr.msra.gmra.mrb[2].mxu0 %vm462_vm0, %v707_v49 }
  0x5a   : > { %1906 = vmatprep.mubr.msk.f32.mxu0 %vm2165_vm2, %v2166_v5 }
 0x10c   : > { %v556_v55 = vpop.f32.mrb[0].mxu0 }
 0x10d   : > { %v557_v56 = vadd.f32 %v1700_v54, %v556_v55  ;;  %v1829_v57 = vpop.f32.mrb[1].mxu0 }
 0x10f   : > { %561 = vst.msk [vmem:[#allocation2] sm:$0xff] %vm560_vm3, %v557_v56 }
 0x116   : > { %v822_v58 = vld [vmem:[#allocation2] sm:$0xff] }
 0x117   : > { %988 = vrot.lane.b32.xlu1 %v822_v58, %s2167_s28  ;;  %1885 = vmatpush3.xpose.msk.msra.mxu1 %vm824_vm4, %v822_v58 }
 0x118   : > { %1889 = vmatprep.subr.mxu1 %v2166_v5 }
 0x127   : > { %v702_v1 = vpop.f32.mrb[0].mxu1 }
 0x128   : > { %v2485_v3 = vadd.f32 %v1710_v0, %v702_v1  ;;  %v1864_v4 = vpop.f32.mrb[1].mxu1  ;;  %v1501_v0 = vld [vmem:[%s2617_s9 + $0x10] sm:$0xff] }
 0x12c   : > { %v817_v60 = vpop.f32.mrb[2].mxu0 }
 0x12d   : > { %v818_v61 = vadd.f32 %v1728_v59, %v817_v60  ;;  %v1883_v62 = vpop.f32.mrb[3].mxu0 }
 0x12e   : > { %v1500_v62 = vld [vmem:[%s2617_s9 + $0x8] sm:$0xff] }
 0x12f   : > { %v821_v63 = vmul.f32 0.25, %v818_v61  ;;  %v1499_v61 = vld [vmem:[%s2617_s9] sm:$0xff] }
 0x131   : > { %986 = vrot.lane.b32.xlu1 %v821_v63, %s2167_s28  ;;  %1887 = vmatmul.mubr.msk.f32.vlgmr.msra.gmra.mrb[2].mxu1 %vm824_vm4, %v821_v63 }
 0x132   : > { %1891 = vmatprep.mubr.msk.f32.mxu1 %vm2165_vm2, %v2166_v5  ;;  %1890 = vmatpush3.msra.mxu1 %v2485_v3 }
 0x133   : > { %1894 = vmatprep.subr.mxu1 %v2166_v5 }
 0x135   : > { %1152 = vrot.lane.b32.xlu1 %v821_v63, %s2168_s13 }
 0x139   : > { %1319 = vrot.lane.b32.xlu1 %v822_v58, %s2169_s15 }
 0x13d   : > { %1317 = vrot.lane.b32.xlu1 %v821_v63, %s2169_s15  ;;  %v2000_v63 = vpack.c.bf16 %v1500_v62, %v1499_v61 }
 0x189   : > { %v989_v14 = vpop.permute.xlu1 %988 }
 0x1a3   : > { %v987_v15 = vpop.permute.xlu1 %986 }
 0x1a7   : > { %v1153_v16 = vpop.permute.xlu1 %1152 }
 0x1ab   : > { %v1320_v19 = vpop.permute.xlu1 %1319 }
 0x1af   : > { %v1318_v21 = vpop.permute.xlu1 %1317 }
 0x204   : > { %v897_v6 = vpop.f32.mrb[2].mxu1 }
 0x205   : > { %v1888_v7 = vpop.f32.mrb[3].mxu1  ;;  %v902_v8 = vsel %vm901_vm5, %v897_v6, -inf }
 0x206   : > { %903 = vmax.xlane.f32.xlu0 %v902_v8 }
 0x293   : > { %v904_v9 = vpop.xlane.xlu0 %903 }
 0x294   : > { %v905_v10 = vsub.f32 %v897_v6, %v904_v9 }
 0x296   : > { %v906_v11 = vmul.f32 1.442695, %v905_v10 }
 0x298   : > { %2068 = vpow2.f32 %v906_v11 }
 0x2a2   : > { %v2069_v12 = vpop.eup %2068 }
 0x2a3   : > { %v908_v13 = vsel %vm901_vm5, %v2069_v12, 0.0 }
 0x2a4   : > { %909 = vadd.xlane.f32.xlu0 %v908_v13 }
 0x2ba   : > { %1154 = vrot.lane.b32.xlu0 %v822_v58, %s2168_s13 }
 0x331   : > { %v910_v17 = vpop.xlane.xlu0 %909 }
 0x332   : > { %2070 = vrcp.f32 %v910_v17 }
 0x335   : > { %v1155_v18 = vpop.permute.xlu0 %1154 }
 0x336   : > { %1905 = vmatpush3.xpose.msk.msra.mxu0 %vm824_vm4, %v1155_v18 }
 0x337   : > { %1914 = vmatprep.subr.mxu0 %v2166_v5 }
 0x339   : > { %1907 = vmatmul.mubr.msk.f32.vlgmr.msra.gmra.mrb[4].mxu0 %vm824_vm4, %v1153_v16 }
 0x33a   : > { %1915 = vmatpush3.xpose.msk.msra.mxu0 %vm824_vm4, %v1320_v19  ;;  %1916 = vmatprep.mubr.msk.f32.mxu0 %vm2165_vm2, %v2166_v5 }
 0x33b   : > { %1999 = vmatprep.subr.bf16.mxu0 %v2164_v2 }
 0x33c   : > { %v2071_v20 = vpop.eup %2070 }
 0x33d   : > { %v912_v22 = vmul.f32 %v2071_v20, %v2069_v12  ;;  %1917 = vmatmul.mubr.msk.f32.vlgmr.msra.gmra.mrb[6].mxu0 %vm824_vm4, %v1318_v21 }
 0x33e   : > { %1932 = vmatprep.mubr.msk.f32.mxu0 %vm2165_vm2, %v2166_v5  ;;  %2001 = vmatpush3.bf16.xpose.msra.mxu0 %v2000_v63 }
 0x33f   : > { %1892 = vmatmul.mubr.msk.f32.vlgmr.msra.gmra.mrb[4].mxu1 %vm901_vm5, %v912_v22  ;;  %2002 = vmatprep.subr.bf16.mxu0 %v2164_v2 }
 0x340   : > { %1895 = vmatpush3.xpose.msk.msra.mxu1 %vm824_vm4, %v989_v14  ;;  %1896 = vmatprep.mubr.msk.f32.mxu1 %vm2165_vm2, %v2166_v5 }
 0x341   : > { %1899 = vmatprep.subr.mxu1 %v2166_v5 }
 0x343   : > { %1897 = vmatmul.mubr.msk.f32.vlgmr.msra.gmra.mrb[6].mxu1 %vm824_vm4, %v987_v15  ;;  %v1750_v15 = vld [vmem:[%s2618_s10] ss:$0 sm:$0xff] }
 0x344   : > { %1901 = vmatprep.mubr.msk.f32.mxu1 %vm2165_vm2, %v2166_v5 }
 0x40c   : > { %v1226_v23 = vpop.f32.mrb[4].mxu0 }
 0x40d   : > { %v1908_v24 = vpop.f32.mrb[5].mxu0  ;;  %v1230_v25 = vsel %vm901_vm5, %v1226_v23, -inf }
 0x40e   : > { %1231 = vmax.xlane.f32.xlu0 %v1230_v25 }
 0x410   : > { %v1391_v26 = vpop.f32.mrb[6].mxu0 }
 0x411   : > { %v1918_v27 = vpop.f32.mrb[7].mxu0  ;;  %v1395_v33 = vsel %vm901_vm5, %v1391_v26, -inf }
 0x412   : > { %v2511_v28 = vpop.f32.mrb[4].mxu1 }
 0x413   : > { %v1893_v29 = vpop.f32.mrb[5].mxu1 }
 0x416   : > { %v1060_v30 = vpop.f32.mrb[6].mxu1 }
 0x417   : > { %v1898_v31 = vpop.f32.mrb[7].mxu1  ;;  %v1064_v32 = vsel %vm901_vm5, %v1060_v30, -inf }
 0x418   : > { %1065 = vmax.xlane.f32.xlu1 %v1064_v32 }
 0x41c   : > { %1396 = vmax.xlane.f32.xlu1 %v1395_v33 }
 0x49b   : > { %v1232_v34 = vpop.xlane.xlu0 %1231 }
 0x49c   : > { %v1233_v35 = vsub.f32 %v1226_v23, %v1232_v34 }
 0x49e   : > { %v1234_v36 = vmul.f32 1.442695, %v1233_v35 }
 0x4a0   : > { %2072 = vpow2.f32 %v1234_v36 }
 0x4a5   : > { %v1066_v37 = vpop.xlane.xlu1 %1065 }
 0x4a6   : > { %v1067_v45 = vsub.f32 %v1060_v30, %v1066_v37 }
 0x4a8   : > { %v1068_v46 = vmul.f32 1.442695, %v1067_v45 }
 0x4a9   : > { %v1397_v38 = vpop.xlane.xlu1 %1396 }
 0x4aa   : > { %v2073_v39 = vpop.eup %2072  ;;  %v1398_v40 = vsub.f32 %v1391_v26, %v1397_v38 }
 0x4ab   : > { %v1236_v41 = vsel %vm901_vm5, %v2073_v39, 0.0 }
 0x4ac   : > { %v1399_v42 = vmul.f32 1.442695, %v1398_v40  ;;  %1237 = vadd.xlane.f32.xlu0 %v1236_v41 }
 0x4ae   : > { %2074 = vpow2.f32 %v1399_v42 }
 0x4af   : > { %2076 = vpow2.f32 %v1068_v46 }
 0x4b8   : > { %v2075_v43 = vpop.eup %2074 }
 0x4b9   : > { %v1401_v44 = vsel %vm901_vm5, %v2075_v43, 0.0  ;;  %v2077_v47 = vpop.eup %2076 }
 0x4ba   : > { %1402 = vadd.xlane.f32.xlu1 %v1401_v44  ;;  %v1070_v48 = vsel %vm901_vm5, %v2077_v47, 0.0 }
 0x4c2   : > { %1076 = vrot.lane.b32.xlu0 %v2485_v3, %s2168_s13 }
 0x4cb   : > { %1241 = vrot.lane.b32.xlu1 %v2485_v3, %s2170_s5 }
 0x4ef   : > { %1071 = vadd.xlane.f32.xlu1 %v1070_v48 }
 0x500   : > { %1406 = vrot.lane.b32.xlu1 %v2485_v3, %s2171_s24 }
 0x539   : > { %v1238_v49 = vpop.xlane.xlu0 %1237 }
 0x53d   : > { %v1077_v50 = vpop.permute.xlu0 %1076 }
 0x53e   : > { %1900 = vmatpush3.msra.mxu1 %v1077_v50 }
 0x53f   : > { %1909 = vmatprep.subr.mxu1 %v2166_v5 }
 0x547   : > { %v1403_v51 = vpop.xlane.xlu1 %1402 }
 0x54b   : > { %v1242_v52 = vpop.permute.xlu1 %1241 }
 0x57c   : > { %v1072_v53 = vpop.xlane.xlu1 %1071 }
 0x57d   : > { %2078 = vrcp.f32 %v1072_v53 }
 0x57e   : > { %2080 = vrcp.f32 %v1238_v49 }
 0x57f   : > { %2082 = vrcp.f32 %v1403_v51 }
 0x580   : > { %v1407_v59 = vpop.permute.xlu1 %1406 }
 0x587   : > { %v2079_v54 = vpop.eup %2078 }
 0x588   : > { %v1074_v55 = vmul.f32 %v2079_v54, %v2077_v47  ;;  %v2081_v56 = vpop.eup %2080 }
 0x589   : > { %v1240_v57 = vmul.f32 %v2081_v56, %v2073_v39  ;;  %v2083_v58 = vpop.eup %2082 }
 0x58a   : > { %1902 = vmatmul.mubr.msk.f32.vlgmr.msra.gmra.mrb[8].mxu1 %vm901_vm5, %v1074_v55  ;;  %v1405_v60 = vmul.f32 %v2083_v58, %v2075_v43 }
 0x58b   : > { %1910 = vmatpush3.msra.mxu1 %v1242_v52  ;;  %1911 = vmatprep.mubr.msk.f32.mxu1 %vm2165_vm2, %v2166_v5 }
 0x58c   : > { %1919 = vmatprep.subr.mxu1 %v2166_v5 }
 0x58e   : > { %1912 = vmatmul.mubr.msk.f32.vlgmr.msra.gmra.mrb[10].mxu1 %vm901_vm5, %v1240_v57 }
 0x58f   : > { %1920 = vmatpush3.msra.mxu1 %v1407_v59  ;;  %1921 = vmatprep.mubr.msk.f32.mxu1 %vm2165_vm2, %v2166_v5  ;;  %v1502_v5 = vld [vmem:[%s2617_s9 + $0x18] sm:$0xff] }
 0x590   : > { %v2003_v1 = vpack.c.bf16 %v1502_v5, %v1501_v0 }
 0x592   : > { %1922 = vmatmul.mubr.msk.f32.vlgmr.msra.gmra.mrb[12].mxu1 %vm901_vm5, %v1405_v60  ;;  %2004 = vmatpush3.bf16.xpose.msra.mxu0 %v2003_v1 }
 0x65d   : > { %v1148_v3 = vpop.f32.mrb[8].mxu1 }
 0x65e   : > { %1483 = vrot.lane.b32.xlu0 %v1148_v3, %s2171_s24  ;;  %v1903_v4 = vpop.f32.mrb[9].mxu1  ;;  %s423_s24 = sand.u32 1, %s2146_s18  }
 0x65f   : > { %s1582_s23 = scalar_lea.sflag [#allocation5], %s423_s24 }
 0x661   : > { %v1313_v6 = vpop.f32.mrb[10].mxu1 }
 0x662   : > { %1487 = vrot.lane.b32.xlu1 %v1313_v6, %s2170_s5  ;;  %v1913_v2 = vpop.f32.mrb[11].mxu1  ;;  %s1696_s5 = sshll.u32 %s423_s24, 3 }
 0x663   : > { %s425_s28 = scalar_lea.vmem [#allocation4], %s1696_s5 }
 0x664   : > { %s1596_s14 = sshll.u32 %s425_s28, 4  ;;  %s2562_s14 = int_to_ptr.vmem [resolvable:$true] %s1596_s14 }
 0x665   : > { %v1478_v7 = vpop.f32.mrb[12].mxu1  ;;  %s2084_s25 = scalar_lea.vmem %s2562_s14, 128 }
 0x666   : > { %1491 = vrot.lane.b32.xlu0 %v1478_v7, %s2168_s13  ;;  %v1923_v8 = vpop.f32.mrb[13].mxu1  ;;  %s1752_s13 = sshll.u32 %s2154_s20, 7  ;;  %p2085_p12 = scmp.ne.s32.totalorder %s2562_s14, %s2084_s25 }
 0x667   : > { %s2560_s16 = scalar_lea.hbm %s2619_s11, %s1752_s13  ;;  %s2172_s20 = smov [#allocation4]  }
 0x668   : > { %p2086_p13 = pnand %p2085_p12, %p2273_p4  ;;  %s2088_s5 = sshll.u32 %s2172_s20, 4  ;;  %s2089_s5 = int_to_ptr.vmem [resolvable:$false] %s2088_s5 }
 0x669   : > { %s2090_s26 = scalar_lea.vmem %s2089_s5, 256  ;;  %p2091_p1 = scmp.lt.s32.totalorder %s2562_s14, %s2089_s5 }
 0x66a   : > { %p2087_p0 = pneg %p2086_p13  ;;  %p2092_p2 = scmp.lt.s32.totalorder %s2090_s26, %s2084_s25 }
 0x66c   : > { %p2093_p3 = por %p2092_p2, %p2091_p1 }
 0x66e   : > { %p2094_p5 = pnand %p2093_p3, %p2087_p0 }
 0x6d0   : > { %v1484_v9 = vpop.permute.xlu0 %1483 }
 0x6d1   : > { %v1494_v11 = vsel %vm462_vm0, %v2511_v28, %v1484_v9 }
 0x6d4   : > { %v1488_v10 = vpop.permute.xlu1 %1487 }
 0x6d5   : > { %v1496_v12 = vsel %vm560_vm3, %v1494_v11, %v1488_v10 }
 0x6d8   : > { %v1492_v13 = vpop.permute.xlu0 %1491 }
 0x6d9   : > { %v1498_v14 = vsel %vm1497_vm6, %v1496_v12, %v1492_v13 }
 0x6da   : > { %1933 = vmatmul.mubr.f32.vlgmr.msra.gmra.mrb[8].mxu0 %v1498_v14 }
 0x7ad   : > { %v1576_v16 = vpop.f32.mrb[8].mxu0 }
 0x7ae   : > { %v1577_v17 = vadd.f32 %v1750_v15, %v1576_v16  ;;  %v1934_v18 = vpop.f32.mrb[9].mxu0 }
 0x7b0   : > { %1580 = vst.msk [vmem:[%s425_s28] sm:$0xff] %vm462_vm0, %v1577_v17 }
 0x7b1   : > { %2097 = shalt.err (!%p2094_p5)
}
 0x7b2   : > { %s2098_s24 = scalar_lea.hbm %s2560_s16, 128  ;;  %s2102_s12 = scalar_lea.hbm %s2619_s11, 256 }
 0x7b3   : > { %p2099_p6 = scmp.ne.s32.totalorder %s2560_s16, %s2098_s24  ;;  %p2103_p10 = scmp.lt.u32.totalorder %s2560_s16, %s2619_s11 }
 0x7b4   : > { %p2104_p11 = scmp.lt.u32.totalorder %s2102_s12, %s2098_s24  ;;  %p2106_p13 = scmp.lt.u32.totalorder %s2098_s24, %s2560_s16 }
 0x7b5   : > { %p2100_p7 = pnand %p2099_p6, %p2273_p4 }
 0x7b6   : > { %p2105_p12 = por %p2104_p11, %p2103_p10 }
 0x7b7   : > { %p2101_p9 = pneg %p2100_p7 }
 0x7b8   : > { %p2107_p0 = por %p2106_p13, %p2105_p12 }
 0x7ba   : > { %p2108_p1 = pnand %p2107_p0, %p2101_p9 }
 0x7bc   : > { %2111 = shalt.err (!%p2108_p1)
}
 0x7bd   : > { %2005 = dma.vmem_to_hbm [thread:$0]  (%p2273_p4), %s2562_s14, 128, %s2560_s16, %s1582_s23  }
 0x7be PF: > { %p2011_p2 = scmp.ge.s32.totalorder %s2162_s22, 2  ;;  %s1608_s25 = sand.u32 1, %s2142_s17  }
 0x7bf   : > { %s1609_s5 = scalar_lea.sflag [#allocation5], %s1608_s25 }
 0x7c0   : > { %p2008_p3 = pnand %p2011_p2, %p2280_p8 }
 0x7c2   : > { %2137 = dma.done.wait (!%p2008_p3), %s1609_s5, 128  }
 0x7c3   : > { %2139 = vsyncadd (!%p2008_p3), %s1609_s5, 4294967168  ;;  %s24_s22 = sadd.s32 1, %s2162_s22   ;;  %s2628_s27 = sld [smem:[#allocation7_spill]] }
 0x7c4   : > { %p21_p5 = scmp.ge.s32.totalorder %s24_s22, 4   ;;  %s2629_s17 = smov %s2146_s18 }
 0x7c5   : > { %s2630_s18 = smov %s2150_s19  ;;  %s2631_s19 = smov %s2286_s30 }
 0x7c6   : > { %s2632_s20 = smov %s2158_s21  ;;  %23 = sbr.rel (!%p21_p5) target bundleno = 6 (0x6), region = 109 }
 0x7c9   : > { %s2633_s21 = smov %s2628_s27 }
 0x7cd   :  { %1614 = vsyncpa [#allocation5], 1 }
 0x7ce   :  { %1616 = vsyncpa [#allocation5 + $0x1], 1 }

</bundles_post_ra>
